<compile_context>
chip_gen: v5e
topology: v5e:2x2
jax: 0.10.0
libtpu: 0.0.40
codegen_flags: <defaults>
</compile_context>

<pallas_src>
import functools
import math

import jax
import jax.numpy as jnp
from jax import lax
from jax.experimental import pallas as pl
from jax.experimental.pallas import tpu as pltpu


def _round_up(v: int, m: int) -> int:
    return -(-v // m) * m


def _vmem_capacity_bytes() -> int:
    try:
        info = pltpu.get_tpu_info()
        cap = getattr(info, "vmem_capacity_bytes", None)
        if cap:
            return int(cap)
    except Exception:
        pass
    return 64 << 20  # conservative: v7x per-TensorCore VMEM


def _ffn_kernel(seed_ref, x_ref, w1_ref, b1_ref, w2_ref, b2_ref, o_ref, acc_ref,
                *, tm: int, tp: int, p_total: int, dropout_p: float,
                training: bool, keep_threshold: int, compute_dtype):
    # Shapes: x (tm, E) | w1 (E, tp) | b1 (1, tp) | w2 (tp, E) | b2 (1, E)
    #         o (tm, E) | acc scratch (tm, E) f32
    j = pl.program_id(1)

    @pl.when(j == 0)
    def _init():
        acc_ref[...] = jnp.zeros_like(acc_ref)

    # --- Linear 1 + bias + ReLU (MXU in compute_dtype, f32 accumulation) ---
    x = x_ref[...].astype(compute_dtype)
    w1 = w1_ref[...].astype(compute_dtype)
    h = jnp.dot(x, w1, preferred_element_type=jnp.float32)
    h = jnp.maximum(h + b1_ref[...].astype(jnp.float32), 0.0)

    # Mask out-of-range hidden columns of a ragged last P tile so they do not
    # contaminate the contraction below (static no-op when P % tp == 0).
    if p_total % tp != 0:
        col = j * tp + lax.broadcasted_iota(jnp.int32, h.shape, 1)
        h = jnp.where(col < p_total, h, 0.0)

    # --- Dropout (inverted scaling, matching F.dropout) -------------------
    if training and dropout_p >= 1.0:
        h = jnp.zeros_like(h)
    elif training and dropout_p > 0.0:
        i = pl.program_id(0)
        row = (lax.broadcasted_iota(jnp.int32, h.shape, 0).astype(jnp.uint32)
               + (i * tm).astype(jnp.uint32))
        colu = (lax.broadcasted_iota(jnp.int32, h.shape, 1).astype(jnp.uint32)
                + (j * tp).astype(jnp.uint32))
        seed = seed_ref[0].astype(jnp.uint32)
        # Stateless counter-based hash (Wang/Murmur-style finalizer) over the
        # global (row, hidden-col, seed) coordinates -> uniform u32.
        z = (row * jnp.uint32(0x9E3779B1)
             + colu * jnp.uint32(0x85EBCA77)
             + seed * jnp.uint32(0x27D4EB2F)
             + jnp.uint32(0x165667B1))
        z = z ^ (z >> 16)
        z = z * jnp.uint32(0x7FEB352D)
        z = z ^ (z >> 15)
        z = z * jnp.uint32(0x846CA68B)
        z = z ^ (z >> 16)
        keep = z >= jnp.uint32(keep_threshold)        # P(drop) = thr / 2^32 = p
        h = jnp.where(keep, h * jnp.float32(1.0 / (1.0 - dropout_p)), 0.0)

    # --- Linear 2: accumulate partial product over the P axis -------------
    acc_ref[...] += jnp.dot(h.astype(compute_dtype),
                            w2_ref[...].astype(compute_dtype),
                            preferred_element_type=jnp.float32)

    @pl.when(j == pl.num_programs(1) - 1)
    def _finalize():
        o_ref[...] = (acc_ref[...] + b2_ref[...].astype(jnp.float32)
                      ).astype(o_ref.dtype)


@functools.lru_cache(maxsize=None)
def _build_ffn_call(M, E, P, tm, tp, x_dtype, w_dtype, out_dtype, compute_dtype,
                    dropout_p, training):
    x_dt = jnp.dtype(x_dtype)
    w_dt = jnp.dtype(w_dtype)
    out_dt = jnp.dtype(out_dtype)
    comp_dt = jnp.dtype(compute_dtype)

    keep_threshold = min(int(round(float(dropout_p) * 2.0 ** 32)), 2 ** 32 - 1)
    kernel = functools.partial(
        _ffn_kernel, tm=tm, tp=tp, p_total=P, dropout_p=float(dropout_p),
        training=bool(training), keep_threshold=keep_threshold,
        compute_dtype=comp_dt)

    grid = (pl.cdiv(M, tm), pl.cdiv(P, tp))

    # VMEM budget: exact buffer sizes + fixed headroom, capped at capacity.
    itx, itw, ito, itc = (x_dt.itemsize, w_dt.itemsize, out_dt.itemsize,
                          comp_dt.itemsize)
    est = (2 * tm * E * itx                 # double-buffered x tiles
           + 2 * tm * E * ito               # double-buffered out tiles
           + 2 * E * tp * itw               # double-buffered W1 tiles
           + 2 * tp * E * itw               # double-buffered W2 tiles
           + 2 * 8 * (tp + E) * itw         # biases (sublane-padded)
           + tm * E * 4                     # f32 accumulator scratch
           + tm * tp * (4 + itc + 4))       # f32 h + compute-dtype h + u32 bits
    cap = max(_vmem_capacity_bytes() - (8 << 20), 32 << 20)
    vmem_limit = int(min(max(est + (4 << 20), 32 << 20), cap))

    cost = pl.CostEstimate(
        flops=4 * M * E * P,
        transcendentals=0,
        bytes_accessed=M * E * (itx + ito) + 2 * E * P * itw + (P + E) * itw)

    call = pl.pallas_call(
        kernel,
        out_shape=jax.ShapeDtypeStruct((M, E), out_dt),
        grid_spec=pltpu.PrefetchScalarGridSpec(
            num_scalar_prefetch=1,                 # dropout seed (SMEM)
            grid=grid,
            in_specs=[
                pl.BlockSpec((tm, E), lambda i, j, s: (i, 0)),   # x row tile
                pl.BlockSpec((E, tp), lambda i, j, s: (0, j)),   # W1 P-tile
                pl.BlockSpec((1, tp), lambda i, j, s: (0, j)),   # b1 P-tile
                pl.BlockSpec((tp, E), lambda i, j, s: (j, 0)),   # W2 P-tile
                pl.BlockSpec((1, E), lambda i, j, s: (0, 0)),    # b2
            ],
            out_specs=pl.BlockSpec((tm, E), lambda i, j, s: (i, 0)),
            scratch_shapes=[pltpu.VMEM((tm, E), jnp.float32)],   # f32 accumulator
        ),
        compiler_params=pltpu.CompilerParams(
            dimension_semantics=("parallel", "arbitrary"),   # M megacore, P reduce
            vmem_limit_bytes=vmem_limit),
        cost_estimate=cost,
    )
    return jax.jit(call)


def positionwise_feedforward(x, w1, b1, w2, b2, *, dropout_p=0.1, training=False,
                             seed=0, tm=None, tp=None,
                             compute_dtype=jnp.bfloat16):
    """x: [B, S, E]; w1: [E, P]; b1: [P]; w2: [P, E]; b2: [E] -> [B, S, E]."""
    B, S, E = x.shape
    P = w1.shape[1]
    assert w1.shape == (E, P) and w2.shape == (P, E)
    assert b1.shape == (P,) and b2.shape == (E,)

    M = B * S
    sub = 16 if x.dtype == jnp.bfloat16 else 8

    # Row tile: big enough to amortize per-step overhead, small enough that the
    # f32 (tm, tp) hidden + accumulator + double-buffered tiles stay in VMEM.
    if tm is None:
        tm = 512 if x.dtype == jnp.bfloat16 else 256
    if tm >= M:
        # Split into 2 tiles when M is large enough so v7x's 2nd TC isn't idle.
        tm = _round_up((M + 1) // 2, sub) if M >= 64 * sub else M
    else:
        tm = _round_up(tm, sub)

    # Hidden-dim tile (lane dim of the W1 block -> multiple of 128 or full P).
    if tp is None:
        tp = min(P, 512)
    if tp >= P:
        tp = P
    else:
        tp = min(_round_up(tp, 128), P)

    x2d = x.reshape(M, E)
    b1_2d = b1.reshape(1, P)
    b2_2d = b2.reshape(1, E)
    seed_arr = jnp.asarray([seed], dtype=jnp.int32)

    fn = _build_ffn_call(M, E, P, tm, tp,
                         str(x.dtype), str(w1.dtype), str(x.dtype),
                         jnp.dtype(compute_dtype).name,
                         float(dropout_p), bool(training))
    out2d = fn(seed_arr, x2d, w1, b1_2d, w2, b2_2d)
    return out2d.reshape(B, S, E)


if __name__ == "__main__":
    # Small but lane-dense shapes (E, P multiples of 128 -> unmasked stores,
    # MXU actually used).  tp < P exercises the hidden-dim grid axis.
    batch, seq, embed_dim, pf_dim = 2, 128, 128, 256
    dropout = 0.1

    key = jax.random.PRNGKey(0)
    kx, k1, k2, k3, k4 = jax.random.split(key, 5)

    x = jax.random.normal(kx, (batch, seq, embed_dim), dtype=jnp.float32)

    # Deterministic nn.Linear-style init, stored already transposed to [in, out].
    bound1 = 1.0 / math.sqrt(embed_dim)
    w1 = jax.random.uniform(k1, (embed_dim, pf_dim), jnp.float32, -bound1, bound1)
    b1 = jax.random.uniform(k2, (pf_dim,), jnp.float32, -bound1, bound1)
    bound2 = 1.0 / math.sqrt(pf_dim)
    w2 = jax.random.uniform(k3, (pf_dim, embed_dim), jnp.float32, -bound2, bound2)
    b2 = jax.random.uniform(k4, (embed_dim,), jnp.float32, -bound2, bound2)

    ref = jnp.maximum(x @ w1 + b1, 0.0) @ w2 + b2

    # 1) Eval mode, f32 compute path (tight check of the fused math).
    out_f32 = positionwise_feedforward(x, w1, b1, w2, b2, dropout_p=dropout,
                                       training=False, tm=64, tp=128,
                                       compute_dtype=jnp.float32)
    out_f32 = jax.block_until_ready(out_f32)
    assert out_f32.shape == (batch, seq, embed_dim)
    assert jnp.allclose(out_f32, ref, atol=5e-3, rtol=5e-3)

    # 2) Eval mode, default bf16 MXU path (fast path; bf16-matmul tolerance).
    out_bf = positionwise_feedforward(x, w1, b1, w2, b2, dropout_p=dropout,
                                      training=False, tm=64, tp=128)
    out_bf = jax.block_until_ready(out_bf)
    assert out_bf.shape == (batch, seq, embed_dim)
    assert jnp.allclose(out_bf, ref, atol=3e-2, rtol=3e-2)

    # 3) Training mode: exercises the in-kernel (hash-PRNG) dropout path.
    out_tr = positionwise_feedforward(x, w1, b1, w2, b2, dropout_p=dropout,
                                      training=True, seed=123, tm=64, tp=128)
    out_tr = jax.block_until_ready(out_tr)
    assert out_tr.shape == (batch, seq, embed_dim)
    assert bool(jnp.all(jnp.isfinite(out_tr)))
    # Dropout must actually perturb the output (kept units are scaled by 1/(1-p)).
    assert not bool(jnp.allclose(out_tr, out_bf, atol=1e-6, rtol=1e-6))

    print("KERNEL_OK")
</pallas_src>

<mosaic_0001>
module attributes {stable_mosaic.version = 11 : i64} {
  func.func @_ffn_kernel(%arg0: i32, %arg1: i32, %arg2: memref<1xi32, #tpu.memory_space<smem>>, %arg3: memref<64x128xf32, #tpu.memory_space<vmem>>, %arg4: memref<128x128xf32, #tpu.memory_space<vmem>>, %arg5: memref<1x128xf32, #tpu.memory_space<vmem>>, %arg6: memref<128x128xf32, #tpu.memory_space<vmem>>, %arg7: memref<1x128xf32, #tpu.memory_space<vmem>>, %arg8: memref<64x128xf32, #tpu.memory_space<vmem>>, %arg9: memref<64x128xf32, #tpu.memory_space<vmem>>) attributes {dimension_semantics = [#tpu.dimension_semantics<parallel>, #tpu.dimension_semantics<arbitrary>], iteration_bounds = array<i64: 4, 2>, scalar_prefetch = 1 : i64, scratch_operands = 1 : i64, tpu.core_type = #tpu.core_type<tc>, window_params = [{transform_indices = @transform_0, window_bounds = array<i64: 64, 128>}, {transform_indices = @transform_1, window_bounds = array<i64: 128, 128>}, {transform_indices = @transform_2, window_bounds = array<i64: 1, 128>}, {transform_indices = @transform_3, window_bounds = array<i64: 128, 128>}, {pipeline_mode = #tpu.pipeline_mode<synchronous>, transform_indices = @transform_4, window_bounds = array<i64: 1, 128>}, {transform_indices = @transform_5, window_bounds = array<i64: 64, 128>}]} {
    %c0_i32 = arith.constant 0 : i32
    %0 = arith.cmpi eq, %arg1, %c0_i32 : i32
    %1 = arith.extui %0 : i1 to i32
    %c0_i32_0 = arith.constant 0 : i32
    %2 = arith.cmpi ne, %1, %c0_i32_0 : i32
    scf.if %2 {
      %cst_15 = arith.constant 0.000000e+00 : f32
      %19 = vector.broadcast %cst_15 : f32 to vector<64x128xf32>
      %c0_16 = arith.constant 0 : index
      %c0_17 = arith.constant 0 : index
      %20 = vector.load %arg9[%c0_16, %c0_17] : memref<64x128xf32, #tpu.memory_space<vmem>>, vector<64x128xf32>
      tpu.vector_store %arg9[%c0_16, %c0_17], %19 {strides = array<i32>} : memref<64x128xf32, #tpu.memory_space<vmem>>, vector<64x128xf32>,
    } else {
    }
    %c0 = arith.constant 0 : index
    %c0_1 = arith.constant 0 : index
    %3 = vector.load %arg3[%c0, %c0_1] : memref<64x128xf32, #tpu.memory_space<vmem>>, vector<64x128xf32>
    %c0_2 = arith.constant 0 : index
    %c0_3 = arith.constant 0 : index
    %4 = vector.load %arg4[%c0_2, %c0_3] : memref<128x128xf32, #tpu.memory_space<vmem>>, vector<128x128xf32>
    %cst = arith.constant dense<0.000000e+00> : vector<64x128xf32>
    %5 = tpu.matmul %3, %4, %cst {dimension_numbers = #tpu.dot_dimension_numbers<[1], [0], [0], [1], [0, 0, 1, 1], [], []>} : vector<64x128xf32>, vector<128x128xf32>, vector<64x128xf32> -> vector<64x128xf32>
    %c0_4 = arith.constant 0 : index
    %c0_5 = arith.constant 0 : index
    %6 = vector.load %arg5[%c0_4, %c0_5] : memref<1x128xf32, #tpu.memory_space<vmem>>, vector<1x128xf32>
    %7 = vector.broadcast %6 : vector<1x128xf32> to vector<64x128xf32>
    %8 = arith.addf %5, %7 : vector<64x128xf32>
    %cst_6 = arith.constant 0.000000e+00 : f32
    %9 = vector.broadcast %cst_6 : f32 to vector<64x128xf32>
    %10 = arith.maximumf %8, %9 : vector<64x128xf32>
    %c0_7 = arith.constant 0 : index
    %c0_8 = arith.constant 0 : index
    %11 = vector.load %arg9[%c0_7, %c0_8] : memref<64x128xf32, #tpu.memory_space<vmem>>, vector<64x128xf32>
    %c0_9 = arith.constant 0 : index
    %c0_10 = arith.constant 0 : index
    %12 = vector.load %arg6[%c0_9, %c0_10] : memref<128x128xf32, #tpu.memory_space<vmem>>, vector<128x128xf32>
    %cst_11 = arith.constant dense<0.000000e+00> : vector<64x128xf32>
    %13 = tpu.matmul %10, %12, %cst_11 {dimension_numbers = #tpu.dot_dimension_numbers<[1], [0], [0], [1], [0, 0, 1, 1], [], []>} : vector<64x128xf32>, vector<128x128xf32>, vector<64x128xf32> -> vector<64x128xf32>
    %14 = arith.addf %11, %13 : vector<64x128xf32>
    %c0_12 = arith.constant 0 : index
    %c0_13 = arith.constant 0 : index
    %15 = vector.load %arg9[%c0_12, %c0_13] : memref<64x128xf32, #tpu.memory_space<vmem>>, vector<64x128xf32>
    tpu.vector_store %arg9[%c0_12, %c0_13], %14 {strides = array<i32>} : memref<64x128xf32, #tpu.memory_space<vmem>>, vector<64x128xf32>,
    %c1_i32 = arith.constant 1 : i32
    %16 = arith.cmpi eq, %arg1, %c1_i32 : i32
    %17 = arith.extui %16 : i1 to i32
    %c0_i32_14 = arith.constant 0 : i32
    %18 = arith.cmpi ne, %17, %c0_i32_14 : i32
    scf.if %18 {
      %c0_15 = arith.constant 0 : index
      %c0_16 = arith.constant 0 : index
      %19 = vector.load %arg9[%c0_15, %c0_16] : memref<64x128xf32, #tpu.memory_space<vmem>>, vector<64x128xf32>
      %c0_17 = arith.constant 0 : index
      %c0_18 = arith.constant 0 : index
      %20 = vector.load %arg7[%c0_17, %c0_18] : memref<1x128xf32, #tpu.memory_space<vmem>>, vector<1x128xf32>
      %21 = vector.broadcast %20 : vector<1x128xf32> to vector<64x128xf32>
      %22 = arith.addf %19, %21 : vector<64x128xf32>
      %c0_19 = arith.constant 0 : index
      %c0_20 = arith.constant 0 : index
      %23 = vector.load %arg8[%c0_19, %c0_20] : memref<64x128xf32, #tpu.memory_space<vmem>>, vector<64x128xf32>
      tpu.vector_store %arg8[%c0_19, %c0_20], %22 {strides = array<i32>} : memref<64x128xf32, #tpu.memory_space<vmem>>, vector<64x128xf32>,
    } else {
    }
    return
  }
  func.func @transform_0(%arg0: i32, %arg1: i32, %arg2: memref<1xi32, #tpu.memory_space<smem>>) -> (i32, i32) {
    %c0_i32 = arith.constant 0 : i32
    %c0_i32_0 = arith.constant 0 : i32
    return %arg0, %c0_i32 : i32, i32
  }
  func.func @transform_1(%arg0: i32, %arg1: i32, %arg2: memref<1xi32, #tpu.memory_space<smem>>) -> (i32, i32) {
    %c0_i32 = arith.constant 0 : i32
    %c0_i32_0 = arith.constant 0 : i32
    return %c0_i32, %arg1 : i32, i32
  }
  func.func @transform_2(%arg0: i32, %arg1: i32, %arg2: memref<1xi32, #tpu.memory_space<smem>>) -> (i32, i32) {
    %c0_i32 = arith.constant 0 : i32
    %c0_i32_0 = arith.constant 0 : i32
    return %c0_i32, %arg1 : i32, i32
  }
  func.func @transform_3(%arg0: i32, %arg1: i32, %arg2: memref<1xi32, #tpu.memory_space<smem>>) -> (i32, i32) {
    %c0_i32 = arith.constant 0 : i32
    %c0_i32_0 = arith.constant 0 : i32
    return %arg1, %c0_i32 : i32, i32
  }
  func.func @transform_4(%arg0: i32, %arg1: i32, %arg2: memref<1xi32, #tpu.memory_space<smem>>) -> (i32, i32) {
    %c0_i32 = arith.constant 0 : i32
    %c0_i32_0 = arith.constant 0 : i32
    %c0_i32_1 = arith.constant 0 : i32
    return %c0_i32, %c0_i32_0 : i32, i32
  }
  func.func @transform_5(%arg0: i32, %arg1: i32, %arg2: memref<1xi32, #tpu.memory_space<smem>>) -> (i32, i32) {
    %c0_i32 = arith.constant 0 : i32
    %c0_i32_0 = arith.constant 0 : i32
    return %arg0, %c0_i32 : i32, i32
  }
}

</mosaic_0001>

<bundles_post_ra>
// kernel: tpu_custom_call.1
= control target key start
LH: loop header
LB: loop body
LE: loop exit
PB: predicated region body
PF: predicated region fallthrough
CT: control target
= control target key end

     0   :  { %s1480_s0 = inlined_call_operand.<no memory space> [shape: s32[1], index: 0, kind: input, shape index: {}]   ;;  %s1481_s1 = inlined_call_operand.hbm [shape: f32[256,128], index: 1, kind: input, shape index: {}]   ;;  %s1482_s2 = inlined_call_operand.hbm [shape: f32[128,256], index: 2, kind: input, shape index: {}]   ;;  %s1483_s3 = inlined_call_operand.vmem [shape: f32[1,256], index: 3, kind: input, shape index: {}]   ;;  %s1484_s4 = inlined_call_operand.hbm [shape: f32[256,128], index: 4, kind: input, shape index: {}]   ;;  %s1485_s5 = inlined_call_operand.vmem [shape: f32[1,128], index: 5, kind: input, shape index: {}]   ;;  %s1486_s6 = inlined_call_operand.hbm [shape: f32[256,128], index: 6, kind: output, shape index: {}]  }
   0x1   :  { %1501 = sst [smem:[#allocation26_spill]] %s1482_s2 }
   0x2   :  { %1502 = sst [smem:[#allocation27_spill]] %s1483_s3 }
   0x3   :  { %1503 = sst [smem:[#allocation28_spill]] %s1485_s5 }
   0x4   :  { %1504 = sst [smem:[#allocation29_spill]] %s1486_s6 }
   0x5   :  { %12 = vsyncpa [#allocation6], 0 }
   0x6   :  { %14 = vsyncpa [#allocation6 + $0x1], 0 }
   0x7   :  { %15 = vsyncpa [#allocation9], 0 }
   0x8   :  { %17 = vsyncpa [#allocation9 + $0x1], 0 }
   0x9   :  { %18 = vsyncpa [#allocation7], 0 }
   0xa   :  { %20 = vsyncpa [#allocation7 + $0x1], 0  ;;  %s1148_s0 = smov 0   ;;  %s1150_s21 = smov 0  }
   0xb   :  { %s1152_s22 = smov 0   ;;  %s1154_s23 = smov 0  }
   0xc   :  { %s1156_s24 = smov 0   ;;  %s1158_s25 = smov 0  }
   0xd   :  { %s1160_s26 = smov 0   ;;  %s1162_s27 = smov 0  }
   0xe   :  { %s1164_s28 = smov 0   ;;  %s1166_s29 = smov 0  }
   0xf   :  { %s1168_s30 = smov 0  }
  0x10 LB: > { %1505 = sst [smem:[#allocation15_spill]] %s1073_s22  ;;  %s35_s7 = sadd.s32 1, %s1097_s28  ;;  %s1105_s30 = sphi %s1168_s30, %s26_s30   ;;  %s1101_s29 = sphi %s1166_s29, %s1542_s29   ;;  %s1097_s28 = sphi %s1164_s28, %s1548_s28   ;;  %s1093_s27 = sphi %s1162_s27, %s1540_s27   ;;  %s1089_s26 = sphi %s1160_s26, %s1547_s26   ;;  %s1085_s25 = sphi %s1158_s25, %s1539_s25   ;;  %s1081_s24 = sphi %s1156_s24, %s1546_s24   ;;  %s1077_s23 = sphi %s1154_s23, %s1545_s23   ;;  %s1073_s22 = sphi %s1152_s22, %s1537_s22   ;;  %s1069_s21 = sphi %s1150_s21, %s1544_s21   ;;  %s1065_s0 = sphi %s1148_s0, %s1543_s0  }
  0x11   : > { %1506 = sst [smem:[#allocation16_spill]] %s1077_s23  ;;  %p53_p0 = scmp.eq.s32.totalorder %s1105_s30, 0 }
  0x12   : > { %1507 = sst [smem:[#allocation17_spill]] %s1085_s25  ;;  %p1205_p1 = scmp.ge.s32.totalorder %s35_s7, 2 }
  0x13   : > { %1508 = sst [smem:[#allocation18_spill]] %s1093_s27  ;;  %s71_s9 = sadd.s32 1, %s1073_s22 }
  0x14   : > { %1509 = sst [smem:[#allocation19_spill]] %s1101_s29  ;;  %p78_p2 = scmp.ne.s32.totalorder %s1073_s22, %s1069_s21 }
  0x15   : > { %p84_p3 = scmp.ne.s32.totalorder %s1069_s21, %s1065_s0  ;;  %s1550_s7 = smov (%p1205_p1, %s35_s7), 0 }
  0x16   : > { %1511 = sst [smem:[#allocation20_spill]] %s1550_s7  ;;  %p1220_p4 = por %p78_p2, %p53_p0 }
  0x17   : > { %s68_s11 = ssub.s32 %s1097_s28, %s1550_s7  ;;  %p791_p5 = scmp.lt.s32.totalorder %s1105_s30, 8 }
  0x18   : > { %p69_p6 = scmp.eq.s32.totalorder %s68_s11, 0  ;;  %s232_s12 = sand.u32 1, %s1105_s30  }
  0x19   : > { %s234_s14 = sand.u32 1, %s1073_s22   ;;  %s718_s16 = sshll.u32 %s1097_s28, 3 }
  0x1a   : > { %s1229_s13 = scalar_select %p69_p6, %s1073_s22, %s71_s9  }
  0x1b   : > { %s1232_s15 = sshll.u32 %s234_s14, 7  ;;  %s1514_s2 = sld [smem:[#allocation26_spill]] }
  0x1c   : > { %1513 = sst [smem:[#allocation21_spill]] %s1229_s13  ;;  %s236_s7 = scalar_lea.vmem [#allocation8], %s1232_s15 }
  0x1d   : > { %s243_s6 = sshll.u32 %s236_s7, 4  ;;  %p1243_p7 = pnand %p791_p5, %p1220_p4  ;;  %s244_s6 = int_to_ptr.vmem [resolvable:$true] %s243_s6 }
  0x1e   : > { %p722_p8 = scmp.ge.s32.totalorder %s1105_s30, 1  ;;  %p279_p9 = scmp.lt.s32.totalorder %s1105_s30, 9 }
  0x1f   : > { %s1249_s11 = scalar_lea.sflag [#allocation9], %s232_s12  ;;  %s1107_s7 = smov 256  }
  0x20   : > { %s1489_s14 = smov 128   ;;  %p1256_p10 = pnand %p722_p8, %p279_p9 }
  0x21   : > { %s240_s19 = scalar_lea.hbm %s1514_s2, %s718_s16  ;;  %s1491_s16 = smov 8  }
  0x22   : > { %s241_s20 = sshll.u32 %s240_s19, 4  ;;  %s1261_s17 = sadd.s32 4294967295, %s1105_s30   ;;  %s242_s20 = int_to_ptr.hbm [resolvable:$true] %s241_s20 }
  0x23   : > { %783 = dma.hbm_to_vmem [thread:$0]  (!%p1243_p7), %s242_s20, 2048, %s244_s6, %s1249_s11, %s1107_s7, %s1489_s14, %s1491_s16  }
  0x24   : > { %s711_s12 = sadd.s32 4294967294, %s1105_s30   ;;  %s38_s18 = sadd.s32 1, %s1101_s29 }
  0x25   : > { %s45_s19 = sadd.s32 1, %s1085_s25  ;;  %s1552_s18 = smov (!%p1205_p1, %s38_s18), %s1101_s29 }
  0x26   : > { %p52_p11 = scmp.ne.s32.totalorder %s1085_s25, %s1081_s24  ;;  %p58_p12 = scmp.ne.s32.totalorder %s1081_s24, %s1077_s23 }
  0x27   : > { %p40_p13 = scmp.ge.s32.totalorder %s1552_s18, 4  ;;  %p59_p2 = scmp.eq.s32.totalorder %s1261_s17, 0 }
  0x28   : > { %p1276_p4 = por %p53_p0, %p52_p11  ;;  %p181_p6 = scmp.eq.s32.totalorder %s1261_s17, 7 }
  0x29   : > { %s1554_s18 = smov (%p40_p13, %s1552_s18), 0  ;;  %p1286_p8 = por %p59_p2, %p58_p12 }
  0x2a   : > { %1518 = sst [smem:[#allocation22_spill]] %s1554_s18  ;;  %p1293_p1 = por %p84_p3, %p59_p2 }
  0x2b   : > { %s42_s7 = ssub.s32 %s1101_s29, %s1554_s18  ;;  %p1299_p0 = por %p181_p6, %p52_p11 }
  0x2c   : > { %p43_p9 = scmp.eq.s32.totalorder %s42_s7, 0  ;;  %p187_p13 = scmp.eq.s32.totalorder %s711_s12, 7 }
  0x2d   : > { %s1521_s14 = scalar_select %p1299_p0, 1, 0 }
  0x2e   : > { %s210_s16 = sand.u32 1, %s1085_s25   ;;  %s734_s2 = sshll.u32 %s1101_s29, 6 }
  0x2f   : > { %1522 = sst [smem:[#allocation23_spill]] %s1521_s14  ;;  %p1311_p3 = por %p187_p13, %p58_p12 }
  0x30   : > { %s1306_s13 = scalar_select %p43_p9, %s1085_s25, %s45_s19  }
  0x31   : > { %s1524_s0 = scalar_select %p1311_p3, 1, 0 }
  0x32   : > { %1523 = sst [smem:[#allocation24_spill]] %s1306_s13  ;;  %s714_s22 = sshll.u32 %s210_s16, 6 }
  0x33   : > { %1525 = sst [smem:[#allocation25_spill]] %s1524_s0  ;;  %s219_s5 = scalar_lea.hbm %s1481_s1, %s734_s2 }
  0x34   : > { %s220_s14 = sshll.u32 %s219_s5, 4  ;;  %s214_s12 = scalar_lea.vmem [#allocation5], %s714_s22  ;;  %s221_s14 = int_to_ptr.hbm [resolvable:$true] %s220_s14 }
  0x35   : > { %s222_s7 = sshll.u32 %s214_s12, 4  ;;  %p778_p11 = pnand %p791_p5, %p1276_p4  ;;  %s223_s7 = int_to_ptr.vmem [resolvable:$true] %s222_s7 }
  0x36   : > { %s735_s19 = sshll.u32 %s1097_s28, 7  ;;  %s211_s0 = scalar_lea.sflag [#allocation6], %s210_s16 }
  0x37   : > { %s268_s25 = scalar_lea.hbm %s1484_s4, %s735_s19  ;;  %s1526_s23 = smov 8  }
  0x38   : > { %s1527_s3 = smov 128   ;;  %s269_s2 = sshll.u32 %s268_s25, 4  ;;  %s270_s2 = int_to_ptr.hbm [resolvable:$true] %s269_s2 }
  0x39   : > { %780 = dma.hbm_to_vmem [thread:$0]  (!%p778_p11), %s221_s14, 1024, %s223_s7, %s211_s0, %s1527_s3, %s1527_s3, %s1526_s23  }
  0x3a   : > { %s263_s27 = scalar_lea.vmem [#allocation10], %s1232_s15  ;;  %283 = sbr.rel (%p1256_p10) target bundleno = 447 (0x1bf), region = 40 }
  0x3b   : > { %s271_s5 = sshll.u32 %s263_s27, 4  ;;  %s1339_s22 = sand.u32 (!%p1256_p10), 1, %s1081_s24   ;;  %s272_s5 = int_to_ptr.vmem [resolvable:$true] %s271_s5 }
  0x3c   : > { %786 = dma.hbm_to_vmem [thread:$0]  (!%p1243_p7), %s270_s2, 2048, %s272_s5, %s1249_s11, %s1527_s3, %s1527_s3, %s1526_s23  }
  0x3d   : > { %s723_s29 = sshll.u32 (!%p1256_p10), %s1339_s22, 6  ;;  %s286_s25 = scalar_lea.sflag (!%p1256_p10), [#allocation6], %s1339_s22 }
  0x3e   : > { %s1343_s13 = scalar_lea.vmem (!%p1256_p10), [#allocation5], %s723_s29 }
  0x3f   : > { %1052 = dma.done.wait (%p1286_p8), %s286_s25, 1024  }
  0x40   : > { %1054 = vsyncadd (%p1286_p8), %s286_s25, 4294966272  ;;  %s295_s3 = sand.u32 1, %s1261_s17   ;;  %s297_s23 = sand.u32 1, %s1069_s21  }
  0x41   : > { %s724_s15 = sshll.u32 %s297_s23, 7  ;;  %s296_s9 = scalar_lea.sflag [#allocation9], %s295_s3 }
  0x42   : > { %s1351_s11 = scalar_lea.vmem [#allocation8], %s724_s15 }
  0x43   : > { %1056 = dma.done.wait (%p1293_p1), %s296_s9, 4096  }
  0x44   : > { %1058 = vsyncadd (%p1293_p1), %s296_s9, 4294963200  ;;  %p351_p5 = scmp.lt.s32.totalorder %s1089_s26, 1  ;;  %s1528_s18 = sld [smem:[#allocation27_spill]] }
  0x45   : > { %s1365_s6 = scalar_lea.vmem [#allocation10], %s724_s15  ;;  %s1367_s8 = scalar_lea.vmem [#allocation11], %s723_s29 }
  0x46   : > { %s1359_s14 = scalar_select %p351_p5, %s1089_s26, 1 }
  0x47   : > { %p727_p7 = scmp.ne.s32.totalorder %s1089_s26, 0 }
  0x49   : > { %359 = sbr.rel (%p727_p7) target bundleno = 87 (0x57), region = 56 }
  0x4a   : > { %s353_s17 = scalar_lea.vmem %s1528_s18, %s1359_s14 }
  0x4e   : > { %v1110_v0 = vmov 0.0  }
  0x4f   : > { %360 = vst [vmem:[#allocation2 + $0x30] sm:$0xff] %v1110_v0 }
  0x50   : > { %361 = vst [vmem:[#allocation2] sm:$0xff] %v1110_v0 }
  0x51   : > { %362 = vst [vmem:[#allocation2 + $0x18] sm:$0xff] %v1110_v0 }
  0x52   : > { %363 = vst [vmem:[#allocation2 + $0x10] sm:$0xff] %v1110_v0 }
  0x53   : > { %364 = vst [vmem:[#allocation2 + $0x8] sm:$0xff] %v1110_v0 }
  0x54   : > { %365 = vst [vmem:[#allocation2 + $0x20] sm:$0xff] %v1110_v0 }
  0x55   : > { %366 = vst [vmem:[#allocation2 + $0x28] sm:$0xff] %v1110_v0 }
  0x56   : > { %367 = vst [vmem:[#allocation2 + $0x38] sm:$0xff] %v1110_v0 }
  0x57 PF: > { %v391_v1 = vld [vmem:[%s1351_s11 + $0x78] sm:$0xff]  ;;  %v390_v2 = vld [vmem:[%s1351_s11 + $0x70] sm:$0xff]  ;;  %v389_v3 = vld [vmem:[%s1351_s11 + $0x68] sm:$0xff]  ;;  %p728_p10 = scmp.ne.s32.totalorder %s1089_s26, 1 }
  0x58   : > { %737 = vmatpush.msra.mxu2 %v391_v1  ;;  %396 = vmatpush.msra.mxu0 %v391_v1  ;;  %v388_v4 = vld [vmem:[%s1351_s11 + $0x60] sm:$0xff]  ;;  %v387_v5 = vld [vmem:[%s1351_s11 + $0x58] sm:$0xff]  ;;  %v386_v6 = vld [vmem:[%s1351_s11 + $0x50] sm:$0xff]  ;;  %s1530_s2 = sld [smem:[#allocation28_spill]] (!%p728_p10) }
  0x59   : > { %v385_v7 = vld [vmem:[%s1351_s11 + $0x48] sm:$0xff]  ;;  %v384_v8 = vld [vmem:[%s1351_s11 + $0x40] sm:$0xff]  ;;  %v383_v9 = vld [vmem:[%s1351_s11 + $0x38] sm:$0xff] }
  0x5a   : > { %738 = vmatpush.msra.mxu2 %v390_v2  ;;  %397 = vmatpush.msra.mxu0 %v390_v2  ;;  %v382_v10 = vld [vmem:[%s1351_s11 + $0x30] sm:$0xff]  ;;  %v381_v11 = vld [vmem:[%s1351_s11 + $0x28] sm:$0xff]  ;;  %v380_v12 = vld [vmem:[%s1351_s11 + $0x20] sm:$0xff] }
  0x5b   : > { %v379_v13 = vld [vmem:[%s1351_s11 + $0x18] sm:$0xff]  ;;  %v378_v14 = vld [vmem:[%s1351_s11 + $0x10] sm:$0xff]  ;;  %v377_v17 = vld [vmem:[%s1351_s11 + $0x8] sm:$0xff] }
  0x5c   : > { %739 = vmatpush.msra.mxu2 %v389_v3  ;;  %398 = vmatpush.msra.mxu0 %v389_v3  ;;  %v468_v15 = vld [vmem:[%s1365_s6 + $0x78] sm:$0xff]  ;;  %v467_v16 = vld [vmem:[%s1365_s6 + $0x70] sm:$0xff]  ;;  %v466_v18 = vld [vmem:[%s1365_s6 + $0x68] sm:$0xff] }
  0x5d   : > { %753 = vmatpush.msra.mxu3 %v468_v15  ;;  %469 = vmatpush.msra.mxu1 %v468_v15  ;;  %v376_v19 = vld [vmem:[%s1351_s11] sm:$0xff]  ;;  %v464_v23 = vld [vmem:[%s1365_s6 + $0x58] sm:$0xff]  ;;  %v463_v24 = vld [vmem:[%s1365_s6 + $0x50] sm:$0xff] }
  0x5e   : > { %740 = vmatpush.msra.mxu2 %v388_v4  ;;  %399 = vmatpush.msra.mxu0 %v388_v4  ;;  %v372_v20 = vld [vmem:[%s1343_s13 + $0x20] sm:$0xff]  ;;  %v462_v25 = vld [vmem:[%s1365_s6 + $0x48] sm:$0xff]  ;;  %v460_v29 = vld [vmem:[%s1365_s6 + $0x38] sm:$0xff] }
  0x5f   : > { %754 = vmatpush.msra.mxu3 %v467_v16  ;;  %470 = vmatpush.msra.mxu1 %v467_v16  ;;  %v368_v21 = vld [vmem:[%s1343_s13] sm:$0xff]  ;;  %v373_v26 = vld [vmem:[%s1343_s13 + $0x28] sm:$0xff]  ;;  %v459_v30 = vld [vmem:[%s1365_s6 + $0x30] sm:$0xff] }
  0x60   : > { %741 = vmatpush.msra.mxu2 %v387_v5  ;;  %400 = vmatpush.msra.mxu0 %v387_v5  ;;  %v465_v22 = vld [vmem:[%s1365_s6 + $0x60] sm:$0xff]  ;;  %v369_v27 = vld [vmem:[%s1343_s13 + $0x8] sm:$0xff]  ;;  %v374_v32 = vld [vmem:[%s1343_s13 + $0x30] sm:$0xff] }
  0x61   : > { %755 = vmatpush.msra.mxu3 %v466_v18  ;;  %471 = vmatpush.msra.mxu1 %v466_v18  ;;  %v461_v28 = vld [vmem:[%s1365_s6 + $0x40] sm:$0xff]  ;;  %v458_v31 = vld [vmem:[%s1365_s6 + $0x28] sm:$0xff]  ;;  %v370_v33 = vld [vmem:[%s1343_s13 + $0x10] sm:$0xff] }
  0x62   : > { %742 = vmatpush.msra.mxu2 %v386_v6  ;;  %401 = vmatpush.msra.mxu0 %v386_v6  ;;  %v457_v34 = vld [vmem:[%s1365_s6 + $0x20] sm:$0xff]  ;;  %v456_v35 = vld [vmem:[%s1365_s6 + $0x18] sm:$0xff]  ;;  %v455_v38 = vld [vmem:[%s1365_s6 + $0x10] sm:$0xff] }
  0x63   : > { %756 = vmatpush.msra.mxu3 %v465_v22  ;;  %472 = vmatpush.msra.mxu1 %v465_v22  ;;  %v375_v36 = vld [vmem:[%s1343_s13 + $0x38] sm:$0xff]  ;;  %v454_v39 = vld [vmem:[%s1365_s6 + $0x8] sm:$0xff]  ;;  %v453_v40 = vld [vmem:[%s1365_s6] sm:$0xff] }
  0x64   : > { %743 = vmatpush.msra.mxu2 %v385_v7  ;;  %402 = vmatpush.msra.mxu0 %v385_v7  ;;  %v371_v37 = vld [vmem:[%s1343_s13 + $0x18] sm:$0xff]  ;;  %v887_v41 = vld [vmem:[%s353_s17] ss:$0 sm:$0xff]  ;;  %v445_v2 = vld [vmem:[#allocation2 + $0x30] sm:$0xff] }
  0x65   : > { %757 = vmatpush.msra.mxu3 %v464_v23  ;;  %473 = vmatpush.msra.mxu1 %v464_v23  ;;  %v446_v5 = vld [vmem:[#allocation2] sm:$0xff]  ;;  %v452_v23 = vld [vmem:[#allocation2 + $0x38] sm:$0xff] }
  0x66   : > { %744 = vmatpush.msra.mxu2 %v384_v8  ;;  %403 = vmatpush.msra.mxu0 %v384_v8  ;;  %v449_v8 = vld [vmem:[#allocation2 + $0x8] sm:$0xff] }
  0x67   : > { %758 = vmatpush.msra.mxu3 %v463_v24  ;;  %474 = vmatpush.msra.mxu1 %v463_v24 }
  0x68   : > { %745 = vmatpush.msra.mxu2 %v383_v9  ;;  %404 = vmatpush.msra.mxu0 %v383_v9 }
  0x69   : > { %759 = vmatpush.msra.mxu3 %v462_v25  ;;  %475 = vmatpush.msra.mxu1 %v462_v25 }
  0x6a   : > { %746 = vmatpush.msra.mxu2 %v382_v10  ;;  %405 = vmatpush.msra.mxu0 %v382_v10 }
  0x6b   : > { %760 = vmatpush.msra.mxu3 %v461_v28  ;;  %476 = vmatpush.msra.mxu1 %v461_v28 }
  0x6c   : > { %747 = vmatpush.msra.mxu2 %v381_v11  ;;  %406 = vmatpush.msra.mxu0 %v381_v11  ;;  %v447_v11 = vld [vmem:[#allocation2 + $0x18] sm:$0xff] }
  0x6d   : > { %761 = vmatpush.msra.mxu3 %v460_v29  ;;  %477 = vmatpush.msra.mxu1 %v460_v29 }
  0x6e   : > { %748 = vmatpush.msra.mxu2 %v380_v12  ;;  %407 = vmatpush.msra.mxu0 %v380_v12 }
  0x6f   : > { %762 = vmatpush.msra.mxu3 %v459_v30  ;;  %478 = vmatpush.msra.mxu1 %v459_v30 }
  0x70   : > { %749 = vmatpush.msra.mxu2 %v379_v13  ;;  %408 = vmatpush.msra.mxu0 %v379_v13 }
  0x71   : > { %763 = vmatpush.msra.mxu3 %v458_v31  ;;  %479 = vmatpush.msra.mxu1 %v458_v31 }
  0x72   : > { %750 = vmatpush.msra.mxu2 %v378_v14  ;;  %409 = vmatpush.msra.mxu0 %v378_v14  ;;  %v450_v14 = vld [vmem:[#allocation2 + $0x20] sm:$0xff] }
  0x73   : > { %764 = vmatpush.msra.mxu3 %v457_v34  ;;  %480 = vmatpush.msra.mxu1 %v457_v34 }
  0x74   : > { %751 = vmatpush.msra.mxu2 %v377_v17  ;;  %410 = vmatpush.msra.mxu0 %v377_v17  ;;  %v448_v17 = vld [vmem:[#allocation2 + $0x10] sm:$0xff] }
  0x75   : > { %765 = vmatpush.msra.mxu3 %v456_v35  ;;  %481 = vmatpush.msra.mxu1 %v456_v35 }
  0x76   : > { %752 = vmatpush.msra.mxu2 %v376_v19  ;;  %411 = vmatpush.msra.mxu0 %v376_v19 }
  0x77   : > { %424 = vmatmul.f32.vlgmr.msra.gmra.mxu2 %v372_v20  ;;  %412 = vmatmul.f32.vlgmr.msra.gmra.mxu0 %v368_v21  ;;  %v451_v20 = vld [vmem:[#allocation2 + $0x28] sm:$0xff] }
  0x78   : > { %766 = vmatpush.msra.mxu3 %v455_v38  ;;  %482 = vmatpush.msra.mxu1 %v455_v38 }
  0x7a   : > { %767 = vmatpush.msra.mxu3 %v454_v39  ;;  %483 = vmatpush.msra.mxu1 %v454_v39 }
  0x7c   : > { %768 = vmatpush.msra.mxu3 %v453_v40  ;;  %484 = vmatpush.msra.mxu1 %v453_v40 }
  0x7f   : > { %427 = vmatmul.f32.gmra.mxu2 %v373_v26  ;;  %415 = vmatmul.f32.gmra.mxu0 %v369_v27 }
  0x87   : > { %430 = vmatmul.f32.gmra.mxu2 %v374_v32  ;;  %418 = vmatmul.f32.gmra.mxu0 %v370_v33 }
  0x8f   : > { %433 = vmatmul.f32.gmra.mxu2 %v375_v36  ;;  %421 = vmatmul.f32.gmra.mxu0 %v371_v37 }
  0xf4   : > { %v413_v42 = vpop.f32.mrf.mxu0 }
  0xf5   : > { %v414_v43 = vadd.f32 %v887_v41, %v413_v42 }
  0xf7   : > { %v437_v44 = vmax.f32 %v414_v43, 0.0 }
  0xf9   : > { %485 = vmatmul.f32.vlgmr.msra.gmra.mxu1 %v437_v44 }
  0xfa   : > { %v425_v45 = vpop.f32.mrf.mxu2 }
  0xfb   : > { %v426_v46 = vadd.f32 %v887_v41, %v425_v45 }
  0xfc   : > { %v416_v47 = vpop.f32.mrf.mxu0 }
  0xfd   : > { %v441_v48 = vmax.f32 %v426_v46, 0.0  ;;  %v417_v49 = vadd.f32 %v887_v41, %v416_v47 }
  0xff   : > { %497 = vmatmul.f32.vlgmr.msra.gmra.mxu3 %v441_v48  ;;  %v438_v50 = vmax.f32 %v417_v49, 0.0 }
 0x101   : > { %488 = vmatmul.f32.gmra.mxu1 %v438_v50 }
 0x102   : > { %v428_v51 = vpop.f32.mrf.mxu2 }
 0x103   : > { %v429_v52 = vadd.f32 %v887_v41, %v428_v51 }
 0x104   : > { %v419_v53 = vpop.f32.mrf.mxu0 }
 0x105   : > { %v442_v54 = vmax.f32 %v429_v52, 0.0  ;;  %v420_v55 = vadd.f32 %v887_v41, %v419_v53 }
 0x107   : > { %500 = vmatmul.f32.gmra.mxu3 %v442_v54  ;;  %v439_v56 = vmax.f32 %v420_v55, 0.0 }
 0x109   : > { %491 = vmatmul.f32.gmra.mxu1 %v439_v56 }
 0x10a   : > { %v431_v57 = vpop.f32.mrf.mxu2 }
 0x10b   : > { %v432_v58 = vadd.f32 %v887_v41, %v431_v57 }
 0x10c   : > { %v422_v59 = vpop.f32.mrf.mxu0 }
 0x10d   : > { %v443_v60 = vmax.f32 %v432_v58, 0.0  ;;  %v423_v61 = vadd.f32 %v887_v41, %v422_v59 }
 0x10f   : > { %503 = vmatmul.f32.gmra.mxu3 %v443_v60  ;;  %v440_v62 = vmax.f32 %v423_v61, 0.0 }
 0x111   : > { %494 = vmatmul.f32.gmra.mxu1 %v440_v62 }
 0x112   : > { %v434_v63 = vpop.f32.mrf.mxu2 }
 0x113   : > { %v435_v0 = vadd.f32 %v887_v41, %v434_v63 }
 0x115   : > { %v444_v1 = vmax.f32 %v435_v0, 0.0 }
 0x117   : > { %506 = vmatmul.f32.gmra.mxu3 %v444_v1 }
 0x176   : > { %v486_v3 = vpop.f32.mrf.mxu1 }
 0x177   : > { %v510_v4 = vadd.f32 %v486_v3, %v445_v2 }
 0x179   : > { %518 = vst [vmem:[#allocation2 + $0x30] sm:$0xff] %v510_v4 }
 0x17e   : > { %v489_v6 = vpop.f32.mrf.mxu1 }
 0x17f   : > { %v511_v7 = vadd.f32 %v489_v6, %v446_v5 }
 0x181   : > { %519 = vst [vmem:[#allocation2] sm:$0xff] %v511_v7 }
 0x182   : > { %v498_v9 = vpop.f32.mrf.mxu3 }
 0x183   : > { %v514_v10 = vadd.f32 %v498_v9, %v449_v8 }
 0x185   : > { %522 = vst [vmem:[#allocation2 + $0x8] sm:$0xff] %v514_v10 }
 0x186   : > { %v492_v12 = vpop.f32.mrf.mxu1 }
 0x187   : > { %v512_v13 = vadd.f32 %v492_v12, %v447_v11 }
 0x189   : > { %520 = vst [vmem:[#allocation2 + $0x18] sm:$0xff] %v512_v13 }
 0x18a   : > { %v501_v15 = vpop.f32.mrf.mxu3 }
 0x18b   : > { %v515_v16 = vadd.f32 %v501_v15, %v450_v14 }
 0x18d   : > { %523 = vst [vmem:[#allocation2 + $0x20] sm:$0xff] %v515_v16 }
 0x18e   : > { %v495_v18 = vpop.f32.mrf.mxu1 }
 0x18f   : > { %v513_v19 = vadd.f32 %v495_v18, %v448_v17 }
 0x191   : > { %521 = vst [vmem:[#allocation2 + $0x10] sm:$0xff] %v513_v19 }
 0x192   : > { %v504_v21 = vpop.f32.mrf.mxu3 }
 0x193   : > { %v516_v22 = vadd.f32 %v504_v21, %v451_v20 }
 0x195   : > { %524 = vst [vmem:[#allocation2 + $0x28] sm:$0xff] %v516_v22 }
 0x199   : > { %529 = sbr.rel (%p728_p10) target bundleno = 425 (0x1a9), region = 60 }
 0x19a   : > { %v507_v24 = vpop.f32.mrf.mxu3 }
 0x19b   : > { %v517_v25 = vadd.f32 %v507_v24, %v452_v23 }
 0x19d   : > { %525 = vst [vmem:[#allocation2 + $0x38] sm:$0xff] %v517_v25 }
 0x19e   : > { %v530_v26 = vld [vmem:[#allocation2 + $0x30] sm:$0xff]  ;;  %v888_v27 = vld [vmem:[%s1530_s2] ss:$0 sm:$0xff]  ;;  %v532_v29 = vld [vmem:[#allocation2 + $0x18] sm:$0xff] }
 0x19f   : > { %v531_v28 = vld [vmem:[#allocation2] sm:$0xff]  ;;  %v533_v30 = vld [vmem:[#allocation2 + $0x10] sm:$0xff]  ;;  %v542_v31 = vadd.f32 %v888_v27, %v530_v26  ;;  %v544_v33 = vadd.f32 %v888_v27, %v532_v29  ;;  %v534_v34 = vld [vmem:[#allocation2 + $0x8] sm:$0xff] }
 0x1a0   : > { %v543_v32 = vadd.f32 %v888_v27, %v531_v28  ;;  %v535_v35 = vld [vmem:[#allocation2 + $0x20] sm:$0xff]  ;;  %v545_v36 = vadd.f32 %v888_v27, %v533_v30  ;;  %v536_v37 = vld [vmem:[#allocation2 + $0x28] sm:$0xff]  ;;  %v546_v38 = vadd.f32 %v888_v27, %v534_v34 }
 0x1a1   : > { %550 = vst [vmem:[%s1367_s8] sm:$0xff] %v542_v31  ;;  %v547_v40 = vadd.f32 %v888_v27, %v535_v35  ;;  %v548_v41 = vadd.f32 %v888_v27, %v536_v37 }
 0x1a2   : > { %551 = vst [vmem:[%s1367_s8 + $0x8] sm:$0xff] %v543_v32 }
 0x1a3   : > { %552 = vst [vmem:[%s1367_s8 + $0x10] sm:$0xff] %v544_v33 }
 0x1a4   : > { %v537_v39 = vld [vmem:[#allocation2 + $0x38] sm:$0xff]  ;;  %553 = vst [vmem:[%s1367_s8 + $0x18] sm:$0xff] %v545_v36 }
 0x1a5   : > { %v549_v42 = vadd.f32 %v888_v27, %v537_v39  ;;  %554 = vst [vmem:[%s1367_s8 + $0x20] sm:$0xff] %v546_v38 }
 0x1a6   : > { %555 = vst [vmem:[%s1367_s8 + $0x28] sm:$0xff] %v547_v40 }
 0x1a7   : > { %556 = vst [vmem:[%s1367_s8 + $0x30] sm:$0xff] %v548_v41 }
 0x1a8   : > { %557 = vst [vmem:[%s1367_s8 + $0x38] sm:$0xff] %v549_v42 }
 0x1a9 PF: > { %s1531_s26 = sld [smem:[#allocation18_spill]]  ;;  %s571_s23 = sshll.u32 %s1367_s8, 4  ;;  %s572_s23 = int_to_ptr.vmem [resolvable:$true] %s571_s23 }
 0x1aa   : > { %s1533_s13 = sld [smem:[#allocation29_spill]]  ;;  %s559_s9 = scalar_lea.sflag [#allocation7], %s1339_s22 }
 0x1af   : > { %s736_s5 = sshll.u32 %s1531_s26, 6 }
 0x1b0   : > { %s570_s3 = scalar_lea.hbm %s1533_s13, %s736_s5  ;;  %s999_s18 = scalar_lea.hbm %s1533_s13, 256 }
 0x1b1   : > { %s573_s15 = sshll.u32 %s570_s3, 4  ;;  %s574_s15 = int_to_ptr.hbm [resolvable:$true] %s573_s15 }
 0x1b2   : > { %s993_s11 = sshra.s32 %s574_s15, 4  ;;  %s994_s11 = int_to_ptr.hbm [resolvable:$true] %s993_s11 }
 0x1b3   : > { %s995_s14 = scalar_lea.hbm %s994_s11, 64  ;;  %p1000_p6 = scmp.lt.s32.totalorder %s994_s11, %s1533_s13 }
 0x1b4   : > { %p996_p12 = scmp.ne.s32.totalorder %s994_s11, %s995_s14  ;;  %p1001_p8 = scmp.lt.s32.totalorder %s999_s18, %s995_s14 }
 0x1b6   : > { %p997_p2 = pnand %p996_p12, %p1299_p0  ;;  %p1002_p1 = por %p1001_p8, %p1000_p6 }
 0x1b8   : > { %p998_p4 = pneg %p997_p2 }
 0x1ba   : > { %p1003_p9 = pnand %p1002_p1, %p998_p4 }
 0x1bc   : > { %1006 = shalt.err (!%p1003_p9)
}
 0x1bd   : > { %s1111_s22 = smov 128   ;;  %s1112_s8 = smov 8  }
 0x1be   : > { %775 = dma.vmem_to_hbm [thread:$0]  (%p1299_p0), %s572_s23, 1024, %s574_s15, %s559_s9, %s1111_s22, %s1111_s22, %s1112_s8  }
 0x1bf PF: > { %s1534_s20 = sld [smem:[#allocation16_spill]]  ;;  %p792_p13 = scmp.ge.s32.totalorder %s1105_s30, 2 }
 0x1c1   : > { %p788_p11 = pnand %p792_p13, %p1311_p3 }
 0x1c3   : > { %p789_p5 = pneg %p788_p11 }
 0x1c5   : > { %s588_s12 = sand.u32 1, %s1534_s20  }
 0x1c6   : > { %s589_s7 = scalar_lea.sflag [#allocation7], %s588_s12 }
 0x1c7   : > { %1060 = dma.done.wait (%p789_p5), %s589_s7, 1024  }
 0x1c8   : > { %1062 = vsyncadd (%p789_p5), %s589_s7, 4294966272  ;;  %s26_s30 = sadd.s32 1, %s1105_s30   ;;  %s1536_s19 = sld [smem:[#allocation15_spill]] }
 0x1c9   : > { %p23_p7 = scmp.ge.s32.totalorder %s26_s30, 10   ;;  %s1537_s22 = sld [smem:[#allocation21_spill]] }
 0x1ca   : > { %s1538_s2 = sld [smem:[#allocation17_spill]]  ;;  %s1543_s0 = smov %s1069_s21 }
 0x1cb   : > { %s1539_s25 = sld [smem:[#allocation24_spill]]  ;;  %s1545_s23 = smov %s1081_s24 }
 0x1cc   : > { %s1540_s27 = sld [smem:[#allocation19_spill]]  ;;  %s1547_s26 = smov %s1097_s28 }
 0x1cd   : > { %s1541_s5 = sld [smem:[#allocation20_spill]] }
 0x1ce   : > { %s1542_s29 = sld [smem:[#allocation22_spill]]  ;;  %s1544_s21 = smov %s1536_s19 }
 0x1cf   :  { %25 = sbr.rel (!%p23_p7) target bundleno = 16 (0x10), region = 120 }
 0x1d0   : > { %s1546_s24 = smov %s1538_s2 }
 0x1d3   : > { %s1548_s28 = smov %s1541_s5 }
 0x1d4   :  { %595 = vsyncpa [#allocation6], 1 }
 0x1d5   :  { %597 = vsyncpa [#allocation6 + $0x1], 1 }
 0x1d6   :  { %598 = vsyncpa [#allocation9], 1 }
 0x1d7   :  { %600 = vsyncpa [#allocation9 + $0x1], 1 }
 0x1d8   :  { %601 = vsyncpa [#allocation7], 1 }
 0x1d9   :  { %603 = vsyncpa [#allocation7 + $0x1], 1 }

</bundles_post_ra>
